<compile_context>
chip_gen: v7x
topology: tpu7x:2x2x1
jax: 0.10.0
libtpu: 0.0.40
codegen_flags: <defaults>
</compile_context>

<pallas_src>
import functools
import math

import jax
import jax.numpy as jnp
from jax import lax
from jax.experimental import pallas as pl
from jax.experimental.pallas import tpu as pltpu


def _round_up(a, b):
    return (a + b - 1) // b * b


# ---------------------------------------------------------------------------
# Single pass: sub-pixel conv matmul (bf16 out) + masked per-tile BN partials.
# ---------------------------------------------------------------------------
def _conv_stats_kernel(p_ref, w_ref, vm_ref, conv_ref, sum_ref, sq_ref):
    # p_ref   : [TM, K]      bf16 im2col patches (one row per base position)
    # w_ref   : [K, Cp]      bf16 sub-pixel weight, Cp = G * C_out_pad (multiple of 128)
    # vm_ref  : [Gp, TM]     bf16 validity mask per sub-pixel phase group (exact 0/1)
    # conv_ref: [TM, Cp]     bf16 conv output in base layout (lane dense)
    # sum_ref : [1, Gp, Cp]  f32 masked partial sums for this tile
    # sq_ref  : [1, Gp, Cp]  f32 masked partial sums of squares for this tile
    acc = jnp.dot(p_ref[...], w_ref[...], preferred_element_type=jnp.float32)
    acc_lo = acc.astype(conv_ref.dtype)
    conv_ref[...] = acc_lo
    vm = vm_ref[...]
    # bf16 operands + f32 accumulation: single-pass MXU, stats precision ~bf16-rounded.
    sum_ref[0] = jnp.dot(vm, acc_lo, preferred_element_type=jnp.float32)
    sq_ref[0] = jnp.dot(vm, (acc * acc).astype(conv_ref.dtype),
                        preferred_element_type=jnp.float32)


def dcgan_generator_conv(x_nchw, weight, gamma, beta, *, stride, padding,
                         eps=1e-5, block_m=512, compute_dtype=jnp.bfloat16):
    """ConvTranspose2d(bias=False) -> BatchNorm2d(train) -> ReLU.

    x_nchw: [N, C_in, H, W]; weight: [C_in, C_out, K, K] (PyTorch layout).
    """
    n, c_in, h, w = x_nchw.shape
    c_in_w, c_out, kh, kw = weight.shape
    assert c_in_w == c_in and kh == kw, "square kernel expected"
    k, s, p = kh, stride, padding
    assert k % s == 0, "sub-pixel fast path requires kernel % stride == 0"
    assert block_m % 128 == 0
    ke = k // s
    h_out = (h - 1) * s - 2 * p + k
    w_out = (w - 1) * s - 2 * p + k
    assert h_out > 0 and w_out > 0

    # --- sub-pixel geometry: base b produces output rows s*b + o0 + t, t in [0,s) ---
    o0 = k - p - s
    p_lo = max(0, -(-o0 // s))          # ceil(o0/s), clipped at 0
    r0 = s * p_lo - o0                  # crop offset into the produced grid, in [0, s)
    bh = -(-(r0 + h_out) // s)          # number of base rows
    bw = -(-(r0 + w_out) // s)          # number of base cols
    p_hi_h = bh - h - p_lo + ke - 1
    p_hi_w = bw - w - p_lo + ke - 1
    assert p_hi_h >= 0 and p_hi_w >= 0

    g = s * s                                        # sub-pixel phases
    gp = _round_up(g, 8)                             # sublane-aligned phase count
    c_pad = _round_up(c_out, 128 // math.gcd(g, 128))
    cp = g * c_pad                                   # lane-dense output width
    k_dim = ke * ke * c_in
    itemsize = jnp.dtype(compute_dtype).itemsize

    # ------------------------- plain-JAX glue (bf16) ---------------------------
    x = jnp.transpose(x_nchw, (0, 2, 3, 1)).astype(compute_dtype)          # NHWC bf16
    xp = jnp.pad(x, ((0, 0), (p_lo, p_hi_h), (p_lo, p_hi_w), (0, 0)))
    cols = [xp[:, jh:jh + bh, jw:jw + bw, :] for jh in range(ke) for jw in range(ke)]
    patches = jnp.concatenate(cols, axis=-1).reshape(n * bh * bw, k_dim)

    m = n * bh * bw
    tm = min(block_m, _round_up(m, 8))
    if _round_up(m, tm) // tm == 1 and tm > 128:
        # Prefer >= 2 tiles (kept a multiple of 128 for lane-dense mask blocks)
        # so both TensorCores on v7x-class chips get work.
        tm = min(tm, _round_up(tm // 2, 128))
    mp = _round_up(m, tm)
    num_tiles = mp // tm
    patches = jnp.pad(patches, ((0, mp - m), (0, 0)))

    # W_mat[(jh,jw,ci),(th,tw,co)] = W[ci, co, s*(ke-1-jh)+th, s*(ke-1-jw)+tw]
    wr = weight.astype(jnp.float32).reshape(c_in, c_out, ke, s, ke, s)
    wr = jnp.flip(wr, axis=(2, 4))
    wr = jnp.transpose(wr, (2, 4, 0, 3, 5, 1))        # [ke, ke, c_in, s, s, c_out]
    wr = jnp.pad(wr, ((0, 0),) * 5 + ((0, c_pad - c_out),))
    w_mat = wr.reshape(k_dim, cp).astype(compute_dtype)

    # validity mask: which produced positions fall inside the real output window
    pr_h = s * jnp.arange(bh)[:, None] + jnp.arange(s)[None, :]
    pr_w = s * jnp.arange(bw)[:, None] + jnp.arange(s)[None, :]
    vh = (pr_h >= r0) & (pr_h < r0 + h_out)           # [bh, s]
    vw = (pr_w >= r0) & (pr_w < r0 + w_out)           # [bw, s]
    vm = (vh[:, None, :, None] & vw[None, :, None, :]).astype(compute_dtype)
    vm = jnp.broadcast_to(vm[None], (n, bh, bw, s, s)).reshape(m, g)
    vm_t = jnp.pad(vm, ((0, mp - m), (0, gp - g))).T  # [gp, mp], exact 0/1 in bf16

    # VMEM budget (double-buffered inputs/outputs) with headroom, capped at the
    # smallest physical VMEM across targets (v7x: 64 MiB).
    vmem_need = (2 * tm * k_dim * itemsize          # patches
                 + 2 * k_dim * cp * itemsize        # weight (constant block)
                 + 2 * gp * tm * itemsize           # mask
                 + 2 * tm * cp * itemsize           # conv output (bf16)
                 + 2 * 2 * gp * cp * 4)             # stats partials (f32)
    vmem_limit = int(min(max(2 * vmem_need, 32 * 1024 * 1024), 64 * 1024 * 1024))

    cost = pl.CostEstimate(
        flops=2 * mp * k_dim * cp + 2 * 2 * mp * gp * cp,
        transcendentals=0,
        bytes_accessed=(mp * k_dim * itemsize + k_dim * cp * itemsize
                        + gp * mp * itemsize + mp * cp * itemsize
                        + 2 * num_tiles * gp * cp * 4),
    )

    # ------------------------- Pallas: conv + BN partials ----------------------
    conv_flat, sum_p, sq_p = pl.pallas_call(
        _conv_stats_kernel,
        grid=(num_tiles,),
        in_specs=[
            pl.BlockSpec((tm, k_dim), lambda i: (i, 0)),
            pl.BlockSpec((k_dim, cp), lambda i: (0, 0)),
            pl.BlockSpec((gp, tm), lambda i: (0, i)),
        ],
        out_specs=[
            pl.BlockSpec((tm, cp), lambda i: (i, 0)),
            pl.BlockSpec((1, gp, cp), lambda i: (i, 0, 0)),
            pl.BlockSpec((1, gp, cp), lambda i: (i, 0, 0)),
        ],
        out_shape=[
            jax.ShapeDtypeStruct((mp, cp), compute_dtype),
            jax.ShapeDtypeStruct((num_tiles, gp, cp), jnp.float32),
            jax.ShapeDtypeStruct((num_tiles, gp, cp), jnp.float32),
        ],
        compiler_params=pltpu.CompilerParams(
            dimension_semantics=("parallel",),
            vmem_limit_bytes=vmem_limit),
        cost_estimate=cost,
    )(patches, w_mat, vm_t)

    # ---------------- tiny wrapper reduce: BN stats -> scale/shift -------------
    idx = jnp.arange(g)
    ch_sum = sum_p.sum(axis=0)[:g].reshape(g, g, c_pad)[idx, idx].sum(axis=0)[:c_out]
    ch_sq = sq_p.sum(axis=0)[:g].reshape(g, g, c_pad)[idx, idx].sum(axis=0)[:c_out]
    count = n * h_out * w_out
    mean = ch_sum / count
    var = jnp.maximum(ch_sq / count - mean * mean, 0.0)   # biased (train-mode) variance
    rstd = lax.rsqrt(var + eps)
    scale = gamma.astype(jnp.float32) * rstd
    shift = beta.astype(jnp.float32) - mean * scale
    scale_full = jnp.tile(jnp.pad(scale, (0, c_pad - c_out)), g)   # [cp]
    shift_full = jnp.tile(jnp.pad(shift, (0, c_pad - c_out)), g)   # [cp]

    # ---- fused epilogue (XLA): affine + ReLU + pixel shuffle + crop + NCHW ----
    y = jnp.maximum(conv_flat[:m].astype(jnp.float32) * scale_full + shift_full, 0.0)
    y = y.reshape(n, bh, bw, s, s, c_pad)[..., :c_out]
    y = jnp.transpose(y, (0, 1, 3, 2, 4, 5)).reshape(n, s * bh, s * bw, c_out)
    y = y[:, r0:r0 + h_out, r0:r0 + w_out, :]
    return jnp.transpose(y, (0, 3, 1, 2))


if __name__ == "__main__":
    N, C_IN, H, W = 2, 4, 16, 16
    C_OUT, K, STRIDE, PAD = 8, 4, 2, 1
    EPS = 1e-5

    key = jax.random.PRNGKey(0)
    kx, kw_, kg, kb = jax.random.split(key, 4)
    # Quantize inputs to the bf16 grid so the bf16-MXU kernel and the f32 reference
    # see identical operands (remaining differences are bf16 intermediate rounding
    # and accumulation order only).
    x = jax.random.normal(kx, (N, C_IN, H, W), jnp.float32)
    x = x.astype(jnp.bfloat16).astype(jnp.float32)
    weight = 0.05 * jax.random.normal(kw_, (C_IN, C_OUT, K, K), jnp.float32)
    weight = weight.astype(jnp.bfloat16).astype(jnp.float32)
    gamma = 1.0 + 0.1 * jax.random.normal(kg, (C_OUT,), jnp.float32)
    beta = 0.1 * jax.random.normal(kb, (C_OUT,), jnp.float32)

    fwd = jax.jit(functools.partial(dcgan_generator_conv,
                                    stride=STRIDE, padding=PAD, eps=EPS))
    out = jax.block_until_ready(fwd(x, weight, gamma, beta))

    # Plain-JAX reference: ConvTranspose2d == conv_general_dilated with lhs_dilation,
    # flipped kernel, (k-1-p) padding; then train-mode BatchNorm2d + ReLU.
    w_oihw = jnp.transpose(jnp.flip(weight, axis=(2, 3)), (1, 0, 2, 3))
    conv_ref = lax.conv_general_dilated(
        x, w_oihw, window_strides=(1, 1),
        padding=[(K - 1 - PAD, K - 1 - PAD), (K - 1 - PAD, K - 1 - PAD)],
        lhs_dilation=(STRIDE, STRIDE),
        dimension_numbers=("NCHW", "OIHW", "NCHW"))
    mean = conv_ref.mean(axis=(0, 2, 3), keepdims=True)
    var = ((conv_ref - mean) ** 2).mean(axis=(0, 2, 3), keepdims=True)
    ref = (conv_ref - mean) * lax.rsqrt(var + EPS)
    ref = ref * gamma.reshape(1, -1, 1, 1) + beta.reshape(1, -1, 1, 1)
    ref = jnp.maximum(ref, 0.0)

    assert out.shape == (N, C_OUT, (H - 1) * STRIDE - 2 * PAD + K,
                         (W - 1) * STRIDE - 2 * PAD + K)
    err = float(jnp.max(jnp.abs(out - ref)))
    # bf16 conv intermediate + bf16 stats operands -> ~1e-2-scale worst-case error
    # on a unit-variance (post-BN) output.
    assert jnp.allclose(out, ref, atol=3e-2, rtol=3e-2), f"max abs err = {err}"
    print("KERNEL_OK")
</pallas_src>

<mosaic_0001>
module attributes {stable_mosaic.version = 11 : i64} {
  func.func @_conv_stats_kernel(%arg0: i32, %arg1: memref<512x16xbf16, #tpu.memory_space<vmem>>, %arg2: memref<16x128xbf16, #tpu.memory_space<vmem>>, %arg3: memref<8x512xbf16, #tpu.memory_space<vmem>>, %arg4: memref<512x128xbf16, #tpu.memory_space<vmem>>, %arg5: memref<1x8x128xf32, #tpu.memory_space<vmem>>, %arg6: memref<1x8x128xf32, #tpu.memory_space<vmem>>) attributes {dimension_semantics = [#tpu.dimension_semantics<parallel>], iteration_bounds = array<i64: 2>, scalar_prefetch = 0 : i64, scratch_operands = 0 : i64, tpu.core_type = #tpu.core_type<tc>, window_params = [{transform_indices = @transform_0, window_bounds = array<i64: 512, 16>}, {pipeline_mode = #tpu.pipeline_mode<synchronous>, transform_indices = @transform_1, window_bounds = array<i64: 16, 128>}, {transform_indices = @transform_2, window_bounds = array<i64: 8, 512>}, {transform_indices = @transform_3, window_bounds = array<i64: 512, 128>}, {transform_indices = @transform_4, window_bounds = array<i64: 1, 8, 128>}, {transform_indices = @transform_5, window_bounds = array<i64: 1, 8, 128>}]} {
    %c0 = arith.constant 0 : index
    %c0_0 = arith.constant 0 : index
    %0 = vector.load %arg1[%c0, %c0_0] : memref<512x16xbf16, #tpu.memory_space<vmem>>, vector<512x16xbf16>
    %c0_1 = arith.constant 0 : index
    %c0_2 = arith.constant 0 : index
    %1 = vector.load %arg2[%c0_1, %c0_2] : memref<16x128xbf16, #tpu.memory_space<vmem>>, vector<16x128xbf16>
    %cst = arith.constant dense<0.000000e+00> : vector<512x128xf32>
    %2 = tpu.matmul %0, %1, %cst {dimension_numbers = #tpu.dot_dimension_numbers<[1], [0], [0], [1], [0, 0, 1, 1], [], []>} : vector<512x16xbf16>, vector<16x128xbf16>, vector<512x128xf32> -> vector<512x128xf32>
    %3 = arith.truncf %2 : vector<512x128xf32> to vector<512x128xbf16>
    %c0_3 = arith.constant 0 : index
    %c0_4 = arith.constant 0 : index
    %4 = vector.load %arg4[%c0_3, %c0_4] : memref<512x128xbf16, #tpu.memory_space<vmem>>, vector<512x128xbf16>
    tpu.vector_store %arg4[%c0_3, %c0_4], %3 {strides = array<i32>} : memref<512x128xbf16, #tpu.memory_space<vmem>>, vector<512x128xbf16>,
    %c0_5 = arith.constant 0 : index
    %c0_6 = arith.constant 0 : index
    %5 = vector.load %arg3[%c0_5, %c0_6] : memref<8x512xbf16, #tpu.memory_space<vmem>>, vector<8x512xbf16>
    %cst_7 = arith.constant dense<0.000000e+00> : vector<8x128xf32>
    %6 = tpu.matmul %5, %3, %cst_7 {dimension_numbers = #tpu.dot_dimension_numbers<[1], [0], [0], [1], [0, 0, 1, 1], [], []>} : vector<8x512xbf16>, vector<512x128xbf16>, vector<8x128xf32> -> vector<8x128xf32>
    %c0_8 = arith.constant 0 : index
    %c0_9 = arith.constant 0 : index
    %c0_10 = arith.constant 0 : index
    %7 = vector.load %arg5[%c0_8, %c0_9, %c0_10] : memref<1x8x128xf32, #tpu.memory_space<vmem>>, vector<1x8x128xf32>
    %8 = vector.shape_cast %7 : vector<1x8x128xf32> to vector<8x128xf32>
    %9 = vector.shape_cast %6 : vector<8x128xf32> to vector<1x8x128xf32>
    tpu.vector_store %arg5[%c0_8, %c0_9, %c0_10], %9 {strides = array<i32>} : memref<1x8x128xf32, #tpu.memory_space<vmem>>, vector<1x8x128xf32>,
    %10 = arith.mulf %2, %2 : vector<512x128xf32>
    %11 = arith.truncf %10 : vector<512x128xf32> to vector<512x128xbf16>
    %cst_11 = arith.constant dense<0.000000e+00> : vector<8x128xf32>
    %12 = tpu.matmul %5, %11, %cst_11 {dimension_numbers = #tpu.dot_dimension_numbers<[1], [0], [0], [1], [0, 0, 1, 1], [], []>} : vector<8x512xbf16>, vector<512x128xbf16>, vector<8x128xf32> -> vector<8x128xf32>
    %c0_12 = arith.constant 0 : index
    %c0_13 = arith.constant 0 : index
    %c0_14 = arith.constant 0 : index
    %13 = vector.load %arg6[%c0_12, %c0_13, %c0_14] : memref<1x8x128xf32, #tpu.memory_space<vmem>>, vector<1x8x128xf32>
    %14 = vector.shape_cast %13 : vector<1x8x128xf32> to vector<8x128xf32>
    %15 = vector.shape_cast %12 : vector<8x128xf32> to vector<1x8x128xf32>
    tpu.vector_store %arg6[%c0_12, %c0_13, %c0_14], %15 {strides = array<i32>} : memref<1x8x128xf32, #tpu.memory_space<vmem>>, vector<1x8x128xf32>,
    return
  }
  func.func @transform_0(%arg0: i32) -> (i32, i32) {
    %c0_i32 = arith.constant 0 : i32
    %c0_i32_0 = arith.constant 0 : i32
    return %arg0, %c0_i32 : i32, i32
  }
  func.func @transform_1(%arg0: i32) -> (i32, i32) {
    %c0_i32 = arith.constant 0 : i32
    %c0_i32_0 = arith.constant 0 : i32
    %c0_i32_1 = arith.constant 0 : i32
    return %c0_i32, %c0_i32_0 : i32, i32
  }
  func.func @transform_2(%arg0: i32) -> (i32, i32) {
    %c0_i32 = arith.constant 0 : i32
    %c0_i32_0 = arith.constant 0 : i32
    return %c0_i32, %arg0 : i32, i32
  }
  func.func @transform_3(%arg0: i32) -> (i32, i32) {
    %c0_i32 = arith.constant 0 : i32
    %c0_i32_0 = arith.constant 0 : i32
    return %arg0, %c0_i32 : i32, i32
  }
  func.func @transform_4(%arg0: i32) -> (i32, i32, i32) {
    %c0_i32 = arith.constant 0 : i32
    %c0_i32_0 = arith.constant 0 : i32
    %c0_i32_1 = arith.constant 0 : i32
    return %arg0, %c0_i32, %c0_i32_0 : i32, i32, i32
  }
  func.func @transform_5(%arg0: i32) -> (i32, i32, i32) {
    %c0_i32 = arith.constant 0 : i32
    %c0_i32_0 = arith.constant 0 : i32
    %c0_i32_1 = arith.constant 0 : i32
    return %arg0, %c0_i32, %c0_i32_0 : i32, i32, i32
  }
}

</mosaic_0001>

<bundles_post_ra>
// kernel: tile.13
= control target key start
LH: loop header
LB: loop body
LE: loop exit
PB: predicated region body
PF: predicated region fallthrough
CT: control target
= control target key end

     0   :  { %s22_s0 = inlined_call_operand.vmem [shape: f32[32], index: 0, kind: input, shape index: {}]   ;;  %s23_s1 = inlined_call_operand.vmem [shape: f32[4,32], index: 1, kind: output, shape index: {}]  }
   0x1   :  { %v4_v0 = vld [vmem:[%s22_s0] ss:$0 sm:$0xff] }
   0x2   :  { %5 = vst [vmem:[%s23_s1] sm:$0xf] %v4_v0 }

// kernel: mul.15
= control target key start
LH: loop header
LB: loop body
LE: loop exit
PB: predicated region body
PF: predicated region fallthrough
CT: control target
= control target key end

     0   :  { %vm7_vm0 = vcmask 261120   ;;  %s37_s8 = smov 32   ;;  %s38_s9 = smov 64   ;;  %vm13_vm1 = vcmask 1048320   ;;  %vm19_vm2 = vcmask 785920   ;;  %vm25_vm3 = vcmask 523520   ;;  %s55_s0 = inlined_call_operand.vmem [shape: f32[4,32], index: 0, kind: input, shape index: {}]   ;;  %s56_s1 = inlined_call_operand.vmem [shape: f32[128], index: 1, kind: output, shape index: {}]  }
   0x1   :  { %v4_v0 = vld [vmem:[%s55_s0] sm:$0xf]  ;;  %s36_s0 = smov 96  }
   0x2   :  { %5 = vst [vmem:[#allocation1] sm:$0xf] %v4_v0 }
   0x9   :  { %v10_v1 = vld [vmem:[#allocation1 + $0x3] sm:$0x1]   ;;  %v22_v2 = vld [vmem:[#allocation1 + $0x1] sm:$0x1]   ;;  %v6_v3 = vld [vmem:[#allocation1] sm:$0x1]  }
   0xa   :  { %11 = vrot.lane.b32.xlu0 %v10_v1, %s36_s0  ;;  %23 = vrot.lane.b32.xlu1 %v22_v2, %s37_s8  ;;  %v16_v4 = vld [vmem:[#allocation1 + $0x2] sm:$0x1]   ;;  %8 = vst.msk [vmem:[#allocation0] sm:$0x1] %vm7_vm0, %v6_v3  }
   0xe   :  { %17 = vrot.lane.b32.xlu0 %v16_v4, %s38_s9 }
  0x7c   :  { %v12_v5 = vpop.permute.xlu0 %11   ;;  %v24_v6 = vpop.permute.xlu1 %23  }
  0x7d   :  { %14 = vst.msk [vmem:[#allocation0] sm:$0x1] %vm13_vm1, %v12_v5  }
  0x80   :  { %v18_v7 = vpop.permute.xlu0 %17  }
  0x81   :  { %20 = vst.msk [vmem:[#allocation0] sm:$0x1] %vm19_vm2, %v18_v7  }
  0x82   :  { %26 = vst.msk [vmem:[#allocation0] sm:$0x1] %vm25_vm3, %v24_v6  }
  0x89   :  { %v30_v8 = vld [vmem:[#allocation0] sm:$0x1] }
  0x8a   :  { %32 = vst [vmem:[%s56_s1] sm:$0x1] %v30_v8 }

// kernel: dcgan_generator_conv.1
= control target key start
LH: loop header
LB: loop body
LE: loop exit
PB: predicated region body
PF: predicated region fallthrough
CT: control target
= control target key end

     0   :  { %s2287_s18 = smov 0   ;;  %s2775_s0 = inlined_call_operand.vmem [shape: bf16[1024,16], index: 0, kind: input, shape index: {}]   ;;  %s2776_s1 = inlined_call_operand.vmem [shape: bf16[16,128], index: 1, kind: input, shape index: {}]   ;;  %s2777_s2 = inlined_call_operand.vmem [shape: bf16[8,1024], index: 2, kind: input, shape index: {}]   ;;  %s2778_s3 = inlined_call_operand.vmem [shape: bf16[1024,128], index: 3, kind: output, shape index: {0}]   ;;  %s2779_s4 = inlined_call_operand.vmem [shape: f32[2,8,128], index: 4, kind: output, shape index: {1}]   ;;  %s2780_s5 = inlined_call_operand.vmem [shape: f32[2,8,128], index: 5, kind: output, shape index: {2}]  }
   0x1 LB: > { %s2293_s19 = sadd.s32 4294967295, %s2255_s18   ;;  %p1618_p0 = scmp.ge.s32.totalorder %s2255_s18, 1  ;;  %s2255_s18 = sphi %s2287_s18, %s16_s18  }
   0x2   : > { %p204_p1 = scmp.lt.s32.totalorder %s2255_s18, 3 }
   0x4   : > { %p205_p2 = pnand %p1618_p0, %p204_p1 }
   0x6   : > { %208 = sbr.rel (%p205_p2) target bundleno = 648 (0x288), region = 32 }
   0xd   : > { %v2212_v0 = vld [vmem:[%s2776_s1] sm:$0xff]   ;;  %s1619_s22 = sshll.u32 %s2293_s19, 6  ;;  %vm504_vm0 = vcmask 130048   ;;  %s1621_s27 = sshll.u32 %s2293_s19, 2 }
   0xe   : > { %p246_p3 = scmp.lt.s32.totalorder %s1619_s22, 127  ;;  %2138 = vmatprep.subr.bf16.mxu0 %v2212_v0  ;;  %p252_p4 = scmp.lt.s32.totalorder %s1621_s27, 7 }
   0xf   : > { %2139 = vmatpush3.bf16.msra.mxu0 %v2212_v0  ;;  %p263_p5 = scmp.lt.s32.totalorder %s2293_s19, 1 }
  0x10   : > { %s2861_s22 = smov (!%p246_p3, %s1619_s22), 127  ;;  %s2863_s27 = smov (!%p252_p4, %s1621_s27), 7 }
  0x11   : > { %s1620_s23 = sshll.u32 %s2861_s22, 2  ;;  %s1622_s28 = sshll.u32 %s2863_s27, 2 }
  0x12   : > { %s2309_s26 = scalar_lea.vmem %s2775_s0, %s1620_s23  ;;  %s2379_s6 = scalar_lea.vmem %s2777_s2, %s1622_s28 }
  0x13   : > { %v2213_v1 = vld [vmem:[%s2309_s26] sm:$0xff]   ;;  %v2214_v2 = vld [vmem:[%s2309_s26 + $0x8] sm:$0xff]   ;;  %v2215_v3 = vld [vmem:[%s2309_s26 + $0x10] sm:$0xff]   ;;  %s2394_s9 = scalar_lea.vmem %s2778_s3, %s1620_s23  ;;  %s2865_s19 = smov (!%p263_p5, %s2293_s19), 1 }
  0x14   : > { %2140 = vmatprep.mubr.msk.bf16.mxu0 %vm504_vm0, %v2213_v1  ;;  %v2216_v4 = vld [vmem:[%s2309_s26 + $0x18] sm:$0xff]   ;;  %v2217_v5 = vld [vmem:[%s2309_s26 + $0x20] sm:$0xff]   ;;  %v2218_v6 = vld [vmem:[%s2309_s26 + $0x28] sm:$0xff]   ;;  %s1625_s10 = sshll.u32 %s2865_s19, 3 }
  0x15   : > { %2141 = vmatmul.mubr.msk.bf16.vlgmr.msra.gmra.mrb[0].mxu0 %vm504_vm0, %v2214_v2  ;;  %v2219_v7 = vld [vmem:[%s2309_s26 + $0x30] sm:$0xff]   ;;  %v2220_v8 = vld [vmem:[%s2309_s26 + $0x38] sm:$0xff]   ;;  %v2221_v9 = vld [vmem:[%s2309_s26 + $0x40] sm:$0xff]   ;;  %s266_s13 = scalar_lea.vmem %s2779_s4, %s1625_s10  ;;  %s270_s16 = scalar_lea.vmem %s2780_s5, %s1625_s10 }
  0x16   : > { %2144 = vmatprep.mubr.msk.bf16.mxu0 %vm504_vm0, %v2215_v3  ;;  %v2222_v10 = vld [vmem:[%s2309_s26 + $0x48] sm:$0xff]   ;;  %v2223_v11 = vld [vmem:[%s2309_s26 + $0x50] sm:$0xff]   ;;  %v2224_v12 = vld [vmem:[%s2309_s26 + $0x58] sm:$0xff]  }
  0x17   : > { %v2225_v13 = vld [vmem:[%s2309_s26 + $0x60] sm:$0xff]   ;;  %v2226_v14 = vld [vmem:[%s2309_s26 + $0x68] sm:$0xff]   ;;  %v2227_v15 = vld [vmem:[%s2309_s26 + $0x70] sm:$0xff]  }
  0x18   : > { %v2228_v16 = vld [vmem:[%s2309_s26 + $0x78] sm:$0xff]   ;;  %v2229_v17 = vld [vmem:[%s2309_s26 + $0x80] sm:$0xff]   ;;  %v2230_v18 = vld [vmem:[%s2309_s26 + $0x88] sm:$0xff]  }
  0x19   : > { %v2231_v19 = vld [vmem:[%s2309_s26 + $0x90] sm:$0xff]   ;;  %v2232_v20 = vld [vmem:[%s2309_s26 + $0x98] sm:$0xff]   ;;  %v2233_v21 = vld [vmem:[%s2309_s26 + $0xa0] sm:$0xff]  }
  0x1a   : > { %v2234_v22 = vld [vmem:[%s2309_s26 + $0xa8] sm:$0xff]   ;;  %v2235_v23 = vld [vmem:[%s2309_s26 + $0xb0] sm:$0xff]   ;;  %v2236_v24 = vld [vmem:[%s2309_s26 + $0xb8] sm:$0xff]  }
  0x1b   : > { %v2237_v25 = vld [vmem:[%s2309_s26 + $0xc0] sm:$0xff]   ;;  %v2238_v26 = vld [vmem:[%s2309_s26 + $0xc8] sm:$0xff]   ;;  %v2239_v27 = vld [vmem:[%s2309_s26 + $0xd0] sm:$0xff]  }
  0x1c   : > { %v2240_v28 = vld [vmem:[%s2309_s26 + $0xd8] sm:$0xff]   ;;  %v2241_v29 = vld [vmem:[%s2309_s26 + $0xe0] sm:$0xff]   ;;  %v2242_v30 = vld [vmem:[%s2309_s26 + $0xe8] sm:$0xff]  }
  0x1d   : > { %2145 = vmatmul.mubr.msk.bf16.gmra.mrb[4].mxu0 %vm504_vm0, %v2216_v4  ;;  %v2243_v31 = vld [vmem:[%s2309_s26 + $0xf0] sm:$0xff]   ;;  %v2244_v32 = vld [vmem:[%s2309_s26 + $0xf8] sm:$0xff]   ;;  %v2382_v33 = vld [vmem:[%s2379_s6] sm:$0xff] }
  0x1e   : > { %2148 = vmatprep.mubr.msk.bf16.mxu0 %vm504_vm0, %v2217_v5  ;;  %v2386_v34 = vcombine.high %v2382_v33, %v2382_v33 }
  0x20   : > { %1258 = vmatprep.mubr.bf16.mxu1 %v2386_v34 }
  0x25   : > { %2149 = vmatmul.mubr.msk.bf16.gmra.mrb[8].mxu0 %vm504_vm0, %v2218_v6 }
  0x26   : > { %2152 = vmatprep.mubr.msk.bf16.mxu0 %vm504_vm0, %v2219_v7 }
  0x2d   : > { %2153 = vmatmul.mubr.msk.bf16.gmra.mrb[12].mxu0 %vm504_vm0, %v2220_v8 }
  0x2e   : > { %2156 = vmatprep.mubr.msk.bf16.mxu0 %vm504_vm0, %v2221_v9 }
  0x35   : > { %2157 = vmatmul.mubr.msk.bf16.gmra.mrb[16].mxu0 %vm504_vm0, %v2222_v10 }
  0x36   : > { %2160 = vmatprep.mubr.msk.bf16.mxu0 %vm504_vm0, %v2223_v11 }
  0x3d   : > { %2161 = vmatmul.mubr.msk.bf16.gmra.mrb[20].mxu0 %vm504_vm0, %v2224_v12 }
  0x3e   : > { %2164 = vmatprep.mubr.msk.bf16.mxu0 %vm504_vm0, %v2225_v13 }
  0x45   : > { %2165 = vmatmul.mubr.msk.bf16.gmra.mrb[24].mxu0 %vm504_vm0, %v2226_v14 }
  0x46   : > { %2168 = vmatprep.mubr.msk.bf16.mxu0 %vm504_vm0, %v2227_v15 }
  0x4d   : > { %2169 = vmatmul.mubr.msk.bf16.gmra.mrb[28].mxu0 %vm504_vm0, %v2228_v16 }
  0x4e   : > { %2172 = vmatprep.mubr.msk.bf16.mxu0 %vm504_vm0, %v2229_v17 }
  0x55   : > { %2173 = vmatmul.mubr.msk.bf16.gmra.mrb[32].mxu0 %vm504_vm0, %v2230_v18 }
  0x56   : > { %2176 = vmatprep.mubr.msk.bf16.mxu0 %vm504_vm0, %v2231_v19 }
  0x5d   : > { %2177 = vmatmul.mubr.msk.bf16.gmra.mrb[36].mxu0 %vm504_vm0, %v2232_v20 }
  0x5e   : > { %2180 = vmatprep.mubr.msk.bf16.mxu0 %vm504_vm0, %v2233_v21 }
  0x65   : > { %2181 = vmatmul.mubr.msk.bf16.gmra.mrb[40].mxu0 %vm504_vm0, %v2234_v22 }
  0x66   : > { %2184 = vmatprep.mubr.msk.bf16.mxu0 %vm504_vm0, %v2235_v23 }
  0x6d   : > { %2185 = vmatmul.mubr.msk.bf16.gmra.mrb[44].mxu0 %vm504_vm0, %v2236_v24 }
  0x6e   : > { %2188 = vmatprep.mubr.msk.bf16.mxu0 %vm504_vm0, %v2237_v25 }
  0x75   : > { %2189 = vmatmul.mubr.msk.bf16.gmra.mrb[48].mxu0 %vm504_vm0, %v2238_v26 }
  0x76   : > { %2192 = vmatprep.mubr.msk.bf16.mxu0 %vm504_vm0, %v2239_v27 }
  0x7d   : > { %2193 = vmatmul.mubr.msk.bf16.gmra.mrb[52].mxu0 %vm504_vm0, %v2240_v28 }
  0x7e   : > { %2196 = vmatprep.mubr.msk.bf16.mxu0 %vm504_vm0, %v2241_v29 }
  0x85   : > { %2197 = vmatmul.mubr.msk.bf16.gmra.mrb[56].mxu0 %vm504_vm0, %v2242_v30 }
  0x86   : > { %2200 = vmatprep.mubr.msk.bf16.mxu0 %vm504_vm0, %v2243_v31 }
  0x8d   : > { %2201 = vmatmul.mubr.msk.bf16.gmra.mrb[60].mxu0 %vm504_vm0, %v2244_v32 }
  0xe8   : > { %v2142_v35 = vpop.f32.mrb[0].mxu0 }
  0xe9   : > { %v635_v36 = vpop.f32.mrb[1].mxu0  ;;  %v2396_v38 = vmul.f32 %v2142_v35, %v2142_v35 }
  0xea   : > { %v2143_v37 = vpop.f32.mrb[2].mxu0  ;;  %v2402_v42 = vmul.f32 %v635_v36, %v635_v36 }
  0xeb   : > { %v2398_v39 = vpack.c.bf16 %v2143_v37, %v2142_v35  ;;  %v2400_v40 = vmul.f32 %v2143_v37, %v2143_v37  ;;  %v638_v41 = vpop.f32.mrb[3].mxu0 }
  0xec   : > { %v2404_v43 = vmul.f32 %v638_v41, %v638_v41  ;;  %v890_v44 = vpack.c.bf16 %v638_v41, %v635_v36 }
  0xed   : > { %1986 = vst [vmem:[%s2394_s9 + $0x8] sm:$0xff] %v2398_v39  }
  0xee   : > { %1830 = vst [vmem:[%s2394_s9] sm:$0xff] %v890_v44  }
  0xf0   : > { %v2146_v47 = vpop.f32.mrb[4].mxu0 }
  0xf1   : > { %v651_v48 = vpop.f32.mrb[5].mxu0  ;;  %v2413_v50 = vmul.f32 %v2146_v47, %v2146_v47 }
  0xf2   : > { %v2147_v49 = vpop.f32.mrb[6].mxu0  ;;  %v2419_v54 = vmul.f32 %v651_v48, %v651_v48 }
  0xf3   : > { %v2415_v51 = vpack.c.bf16 %v2147_v49, %v2146_v47  ;;  %v2417_v52 = vmul.f32 %v2147_v49, %v2147_v49  ;;  %v654_v53 = vpop.f32.mrb[7].mxu0 }
  0xf4   : > { %v2421_v55 = vpack.c.bf16 %v654_v53, %v651_v48  ;;  %v2423_v56 = vmul.f32 %v654_v53, %v654_v53 }
  0xf5   : > { %1988 = vst [vmem:[%s2394_s9 + $0x18] sm:$0xff] %v2415_v51  }
  0xf6   : > { %1987 = vst [vmem:[%s2394_s9 + $0x10] sm:$0xff] %v2421_v55  }
  0xf8   : > { %v2150_v59 = vpop.f32.mrb[8].mxu0 }
  0xf9   : > { %v667_v60 = vpop.f32.mrb[9].mxu0  ;;  %v2433_v62 = vmul.f32 %v2150_v59, %v2150_v59 }
  0xfa   : > { %v2151_v61 = vpop.f32.mrb[10].mxu0  ;;  %v2439_v2 = vmul.f32 %v667_v60, %v667_v60 }
  0xfb   : > { %v2435_v63 = vpack.c.bf16 %v2151_v61, %v2150_v59  ;;  %v2437_v0 = vmul.f32 %v2151_v61, %v2151_v61  ;;  %v670_v1 = vpop.f32.mrb[11].mxu0 }
  0xfc   : > { %v2441_v3 = vpack.c.bf16 %v670_v1, %v667_v60  ;;  %v2443_v4 = vmul.f32 %v670_v1, %v670_v1 }
  0xfd   : > { %1990 = vst [vmem:[%s2394_s9 + $0x28] sm:$0xff] %v2435_v63  }
  0xfe   : > { %1989 = vst [vmem:[%s2394_s9 + $0x20] sm:$0xff] %v2441_v3  }
 0x100   : > { %v2154_v7 = vpop.f32.mrb[12].mxu0 }
 0x101   : > { %v683_v8 = vpop.f32.mrb[13].mxu0  ;;  %v2453_v10 = vmul.f32 %v2154_v7, %v2154_v7 }
 0x102   : > { %v2155_v9 = vpop.f32.mrb[14].mxu0  ;;  %v2459_v14 = vmul.f32 %v683_v8, %v683_v8 }
 0x103   : > { %v2455_v11 = vpack.c.bf16 %v2155_v9, %v2154_v7  ;;  %v2457_v12 = vmul.f32 %v2155_v9, %v2155_v9  ;;  %v686_v13 = vpop.f32.mrb[15].mxu0 }
 0x104   : > { %v2461_v15 = vpack.c.bf16 %v686_v13, %v683_v8  ;;  %v2463_v16 = vmul.f32 %v686_v13, %v686_v13 }
 0x105   : > { %1992 = vst [vmem:[%s2394_s9 + $0x38] sm:$0xff] %v2455_v11  }
 0x106   : > { %1991 = vst [vmem:[%s2394_s9 + $0x30] sm:$0xff] %v2461_v15  }
 0x108   : > { %v2158_v19 = vpop.f32.mrb[16].mxu0 }
 0x109   : > { %v699_v20 = vpop.f32.mrb[17].mxu0  ;;  %v2473_v22 = vmul.f32 %v2158_v19, %v2158_v19 }
 0x10a   : > { %v2159_v21 = vpop.f32.mrb[18].mxu0  ;;  %v2477_v26 = vmul.f32 %v699_v20, %v699_v20 }
 0x10b   : > { %v899_v23 = vpack.c.bf16 %v2159_v21, %v2158_v19  ;;  %v2475_v24 = vmul.f32 %v2159_v21, %v2159_v21  ;;  %v702_v25 = vpop.f32.mrb[19].mxu0 }
 0x10c   : > { %v2479_v27 = vmul.f32 %v702_v25, %v702_v25  ;;  %v898_v28 = vpack.c.bf16 %v702_v25, %v699_v20 }
 0x10d   : > { %1994 = vst [vmem:[%s2394_s9 + $0x48] sm:$0xff] %v899_v23  }
 0x10e   : > { %1993 = vst [vmem:[%s2394_s9 + $0x40] sm:$0xff] %v898_v28   ;;  %2050 = vmatprep.subr.bf16.mxu1 %v898_v28 }
 0x10f   : > { %2051 = vmatpush3.bf16.msra.mxu1 %v890_v44 }
 0x110   : > { %v2162_v31 = vpop.f32.mrb[20].mxu0  ;;  %2052 = vmatprep.subr.bf16.mxu1 %v899_v23 }
 0x111   : > { %v715_v32 = vpop.f32.mrb[21].mxu0  ;;  %v2487_v36 = vmul.f32 %v2162_v31, %v2162_v31 }
 0x112   : > { %v2163_v35 = vpop.f32.mrb[22].mxu0  ;;  %v2492_v48 = vmul.f32 %v715_v32, %v715_v32 }
 0x113   : > { %v901_v37 = vpack.c.bf16 %v2163_v35, %v2162_v31  ;;  %v2489_v41 = vmul.f32 %v2163_v35, %v2163_v35  ;;  %v718_v47 = vpop.f32.mrb[23].mxu0  ;;  %2053 = vmatpush3.bf16.msra.mxu1 %v2398_v39 }
 0x114   : > { %v900_v49 = vpack.c.bf16 %v718_v47, %v715_v32  ;;  %v2494_v53 = vmul.f32 %v718_v47, %v718_v47 }
 0x115   : > { %1996 = vst [vmem:[%s2394_s9 + $0x58] sm:$0xff] %v901_v37  }
 0x116   : > { %1995 = vst [vmem:[%s2394_s9 + $0x50] sm:$0xff] %v900_v49   ;;  %2054 = vmatprep.subr.bf16.mxu1 %v900_v49 }
 0x117   : > { %2055 = vmatpush3.bf16.msra.mxu1 %v2421_v55 }
 0x118   : > { %v2166_v60 = vpop.f32.mrb[24].mxu0  ;;  %2056 = vmatprep.subr.bf16.mxu1 %v901_v37 }
 0x119   : > { %v731_v39 = vpop.f32.mrb[25].mxu0  ;;  %v2503_v1 = vmul.f32 %v2166_v60, %v2166_v60 }
 0x11a   : > { %v2167_v61 = vpop.f32.mrb[26].mxu0  ;;  %v2508_v13 = vmul.f32 %v731_v39, %v731_v39 }
 0x11b   : > { %v903_v7 = vpack.c.bf16 %v2167_v61, %v2166_v60  ;;  %v2505_v8 = vmul.f32 %v2167_v61, %v2167_v61  ;;  %v734_v9 = vpop.f32.mrb[27].mxu0  ;;  %2057 = vmatpush3.bf16.msra.mxu1 %v2415_v51 }
 0x11c   : > { %v902_v19 = vpack.c.bf16 %v734_v9, %v731_v39  ;;  %v2510_v20 = vmul.f32 %v734_v9, %v734_v9  ;;  %v2540_v9 = vcombine.low %v2382_v33, %v2382_v33 }
 0x11d   : > { %1998 = vst [vmem:[%s2394_s9 + $0x68] sm:$0xff] %v903_v7  }
 0x11e   : > { %1997 = vst [vmem:[%s2394_s9 + $0x60] sm:$0xff] %v902_v19   ;;  %2058 = vmatprep.subr.bf16.mxu1 %v902_v19 }
 0x11f   : > { %2059 = vmatpush3.bf16.msra.mxu1 %v2441_v3 }
 0x120   : > { %v2170_v23 = vpop.f32.mrb[28].mxu0  ;;  %2060 = vmatprep.subr.bf16.mxu1 %v903_v7 }
 0x121   : > { %v747_v51 = vpop.f32.mrb[29].mxu0  ;;  %v2519_v28 = vmul.f32 %v2170_v23, %v2170_v23 }
 0x122   : > { %v2171_v25 = vpop.f32.mrb[30].mxu0  ;;  %v2524_v37 = vmul.f32 %v747_v51, %v747_v51 }
 0x123   : > { %v905_v31 = vpack.c.bf16 %v2171_v25, %v2170_v23  ;;  %v2521_v32 = vmul.f32 %v2171_v25, %v2171_v25  ;;  %v750_v35 = vpop.f32.mrb[31].mxu0  ;;  %2061 = vmatpush3.bf16.msra.mxu1 %v2435_v63  ;;  %v2536_v63 = vld [vmem:[%s2379_s6 + $0x8] sm:$0xff] }
 0x124   : > { %v904_v47 = vpack.c.bf16 %v750_v35, %v747_v51  ;;  %v2526_v49 = vmul.f32 %v750_v35, %v750_v35 }
 0x125   : > { %2000 = vst [vmem:[%s2394_s9 + $0x78] sm:$0xff] %v905_v31  }
 0x126   : > { %1999 = vst [vmem:[%s2394_s9 + $0x70] sm:$0xff] %v904_v47   ;;  %2062 = vmatprep.subr.bf16.mxu1 %v904_v47 }
 0x127   : > { %2063 = vmatpush3.bf16.msra.mxu1 %v2461_v15  ;;  %v2551_v15 = vcombine.high %v2536_v63, %v2536_v63 }
 0x128   : > { %v2174_v39 = vpop.f32.mrb[32].mxu0  ;;  %2064 = vmatprep.subr.bf16.mxu1 %v905_v31 }
 0x129   : > { %v763_v61 = vpop.f32.mrb[33].mxu0  ;;  %v2542_v19 = vmul.f32 %v2174_v39, %v2174_v39 }
 0x12a   : > { %v2175_v7 = vpop.f32.mrb[34].mxu0  ;;  %v2553_v31 = vmul.f32 %v763_v61, %v763_v61 }
 0x12b   : > { %2798 = vst [vmem:[#allocation2_spill] sm:$0xff] %v2542_v19  ;;  %v2544_v23 = vpack.c.bf16 %v2175_v7, %v2174_v39  ;;  %v2546_v51 = vmul.f32 %v2175_v7, %v2175_v7  ;;  %v766_v25 = vpop.f32.mrb[35].mxu0  ;;  %2065 = vmatpush3.bf16.msra.mxu1 %v2455_v11 }
 0x12c   : > { %v2555_v35 = vpack.c.bf16 %v766_v25, %v763_v61  ;;  %v2557_v47 = vmul.f32 %v766_v25, %v766_v25 }
 0x12d   : > { %2002 = vst [vmem:[%s2394_s9 + $0x88] sm:$0xff] %v2544_v23  }
 0x12e   : > { %2001 = vst [vmem:[%s2394_s9 + $0x80] sm:$0xff] %v2555_v35   ;;  %1259 = vmatmul.mubr.bf16.vlgmr.msra.gmra.mrb[0].mxu1 %v2540_v9 }
 0x12f   : > { %1298 = vmatprep.mubr.bf16.mxu1 %v2551_v15 }
 0x130   : > { %v2178_v39 = vpop.f32.mrb[36].mxu0 }
 0x131   : > { %v779_v61 = vpop.f32.mrb[37].mxu0  ;;  %v2569_v25 = vmul.f32 %v2178_v39, %v2178_v39 }
 0x132   : > { %v2179_v7 = vpop.f32.mrb[38].mxu0  ;;  %v2575_v18 = vmul.f32 %v779_v61, %v779_v61 }
 0x133   : > { %2799 = vst [vmem:[#allocation3_spill] sm:$0xff] %v2569_v25  ;;  %v2571_v17 = vpack.c.bf16 %v2179_v7, %v2178_v39  ;;  %v2573_v3 = vmul.f32 %v2179_v7, %v2179_v7  ;;  %v782_v33 = vpop.f32.mrb[39].mxu0 }
 0x134   : > { %2801 = vst [vmem:[#allocation5_spill] sm:$0xff] %v2575_v18  ;;  %v2577_v60 = vpack.c.bf16 %v782_v33, %v779_v61  ;;  %v2579_v11 = vmul.f32 %v782_v33, %v782_v33 }
 0x135   : > { %2800 = vst [vmem:[#allocation4_spill] sm:$0xff] %v2573_v3  ;;  %2004 = vst [vmem:[%s2394_s9 + $0x98] sm:$0xff] %v2571_v17  }
 0x136   : > { %2802 = vst [vmem:[#allocation6_spill] sm:$0xff] %v2579_v11  ;;  %2003 = vst [vmem:[%s2394_s9 + $0x90] sm:$0xff] %v2577_v60  }
 0x138   : > { %v2182_v7 = vpop.f32.mrb[40].mxu0 }
 0x139   : > { %v795_v55 = vpop.f32.mrb[41].mxu0  ;;  %v2589_v21 = vmul.f32 %v2182_v7, %v2182_v7 }
 0x13a   : > { %v2183_v6 = vpop.f32.mrb[42].mxu0  ;;  %v2595_v44 = vmul.f32 %v795_v55, %v795_v55 }
 0x13b   : > { %2803 = vst [vmem:[#allocation7_spill] sm:$0xff] %v2589_v21  ;;  %v2591_v61 = vpack.c.bf16 %v2183_v6, %v2182_v7  ;;  %v2593_v33 = vmul.f32 %v2183_v6, %v2183_v6  ;;  %v798_v57 = vpop.f32.mrb[43].mxu0 }
 0x13c   : > { %2805 = vst [vmem:[#allocation9_spill] sm:$0xff] %v2595_v44  ;;  %v2597_v58 = vpack.c.bf16 %v798_v57, %v795_v55  ;;  %v2599_v5 = vmul.f32 %v798_v57, %v798_v57 }
 0x13d   : > { %2804 = vst [vmem:[#allocation8_spill] sm:$0xff] %v2593_v33  ;;  %2006 = vst [vmem:[%s2394_s9 + $0xa8] sm:$0xff] %v2591_v61  }
 0x13e   : > { %2806 = vst [vmem:[#allocation10_spill] sm:$0xff] %v2599_v5  ;;  %2005 = vst [vmem:[%s2394_s9 + $0xa0] sm:$0xff] %v2597_v58  }
 0x140   : > { %v2186_v7 = vpop.f32.mrb[44].mxu0 }
 0x141   : > { %v811_v59 = vpop.f32.mrb[45].mxu0  ;;  %v2609_v29 = vmul.f32 %v2186_v7, %v2186_v7 }
 0x142   : > { %v2187_v45 = vpop.f32.mrb[46].mxu0  ;;  %v2615_v30 = vmul.f32 %v811_v59, %v811_v59 }
 0x143   : > { %2807 = vst [vmem:[#allocation11_spill] sm:$0xff] %v2609_v29  ;;  %v2611_v55 = vpack.c.bf16 %v2187_v45, %v2186_v7  ;;  %v2613_v57 = vmul.f32 %v2187_v45, %v2187_v45  ;;  %v814_v46 = vpop.f32.mrb[47].mxu0 }
 0x144   : > { %2809 = vst [vmem:[#allocation13_spill] sm:$0xff] %v2615_v30  ;;  %v2617_v25 = vpack.c.bf16 %v814_v46, %v811_v59  ;;  %v2619_v39 = vmul.f32 %v814_v46, %v814_v46 }
 0x145   : > { %2808 = vst [vmem:[#allocation12_spill] sm:$0xff] %v2613_v57  ;;  %2008 = vst [vmem:[%s2394_s9 + $0xb8] sm:$0xff] %v2611_v55  }
 0x146   : > { %2810 = vst [vmem:[#allocation14_spill] sm:$0xff] %v2619_v39  ;;  %2007 = vst [vmem:[%s2394_s9 + $0xb0] sm:$0xff] %v2617_v25  }
 0x148   : > { %v2190_v7 = vpop.f32.mrb[48].mxu0 }
 0x149   : > { %v827_v21 = vpop.f32.mrb[49].mxu0  ;;  %v2629_v44 = vmul.f32 %v2190_v7, %v2190_v7 }
 0x14a   : > { %v2191_v33 = vpop.f32.mrb[50].mxu0  ;;  %v2633_v3 = vmul.f32 %v827_v21, %v827_v21 }
 0x14b   : > { %v915_v59 = vpack.c.bf16 %v2191_v33, %v2190_v7  ;;  %v2631_v5 = vmul.f32 %v2191_v33, %v2191_v33  ;;  %v830_v46 = vpop.f32.mrb[51].mxu0 }
 0x14c   : > { %v914_v18 = vpack.c.bf16 %v830_v46, %v827_v21  ;;  %v2635_v11 = vmul.f32 %v830_v46, %v830_v46 }
 0x14d   : > { %2010 = vst [vmem:[%s2394_s9 + $0xc8] sm:$0xff] %v915_v59  }
 0x14e   : > { %2009 = vst [vmem:[%s2394_s9 + $0xc0] sm:$0xff] %v914_v18   ;;  %2072 = vmatprep.subr.bf16.mxu1 %v914_v18 }
 0x14f   : > { %2073 = vmatpush3.bf16.msra.mxu1 %v2555_v35 }
 0x150   : > { %v2194_v33 = vpop.f32.mrb[52].mxu0  ;;  %2074 = vmatprep.subr.bf16.mxu1 %v915_v59 }
 0x151   : > { %v843_v7 = vpop.f32.mrb[53].mxu0  ;;  %v2644_v21 = vmul.f32 %v2194_v33, %v2194_v33 }
 0x152   : > { %v2195_v29 = vpop.f32.mrb[54].mxu0  ;;  %v2649_v6 = vmul.f32 %v843_v7, %v843_v7 }
 0x153   : > { %2811 = vst [vmem:[#allocation15_spill] sm:$0xff] %v2644_v21  ;;  %v917_v46 = vpack.c.bf16 %v2195_v29, %v2194_v33  ;;  %v2646_v57 = vmul.f32 %v2195_v29, %v2195_v29  ;;  %v846_v30 = vpop.f32.mrb[55].mxu0  ;;  %2075 = vmatpush3.bf16.msra.mxu1 %v2544_v23 }
 0x154   : > { %2813 = vst [vmem:[#allocation17_spill] sm:$0xff] %v2649_v6  ;;  %v916_v39 = vpack.c.bf16 %v846_v30, %v843_v7  ;;  %v2651_v45 = vmul.f32 %v846_v30, %v846_v30 }
 0x155   : > { %2812 = vst [vmem:[#allocation16_spill] sm:$0xff] %v2646_v57  ;;  %2012 = vst [vmem:[%s2394_s9 + $0xd8] sm:$0xff] %v917_v46  }
 0x156   : > { %2814 = vst [vmem:[#allocation18_spill] sm:$0xff] %v2651_v45  ;;  %2011 = vst [vmem:[%s2394_s9 + $0xd0] sm:$0xff] %v916_v39   ;;  %2076 = vmatprep.subr.bf16.mxu1 %v916_v39 }
 0x157   : > { %2077 = vmatpush3.bf16.msra.mxu1 %v2577_v60 }
 0x158   : > { %v2198_v29 = vpop.f32.mrb[56].mxu0  ;;  %2078 = vmatprep.subr.bf16.mxu1 %v917_v46 }
 0x159   : > { %v859_v23 = vpop.f32.mrb[57].mxu0  ;;  %v2660_v33 = vmul.f32 %v2198_v29, %v2198_v29 }
 0x15a   : > { %v2199_v59 = vpop.f32.mrb[58].mxu0  ;;  %v1363_v18 = vmul.f32 %v859_v23, %v859_v23 }
 0x15b   : > { %v919_v30 = vpack.c.bf16 %v2199_v59, %v2198_v29  ;;  %v2662_v7 = vmul.f32 %v2199_v59, %v2199_v59  ;;  %v862_v19 = vpop.f32.mrb[59].mxu0  ;;  %2079 = vmatpush3.bf16.msra.mxu1 %v2571_v17 }
 0x15c   : > { %v918_v21 = vpack.c.bf16 %v862_v19, %v859_v23  ;;  %v1364_v57 = vmul.f32 %v862_v19, %v862_v19 }
 0x15d   : > { %2014 = vst [vmem:[%s2394_s9 + $0xe8] sm:$0xff] %v919_v30   ;;  %v1400_v39 = vpack.c.bf16 %v2662_v7, %v2660_v33 }
 0x15e   : > { %2013 = vst [vmem:[%s2394_s9 + $0xe0] sm:$0xff] %v918_v21   ;;  %v1399_v60 = vpack.c.bf16 %v1364_v57, %v1363_v18  ;;  %2080 = vmatprep.subr.bf16.mxu1 %v918_v21  ;;  %v2815_v21 = vpack.c.bf16 %v2479_v27, %v2477_v26  ;;  %v2820_v26 = vpack.c.bf16 %v2423_v56, %v2419_v54  ;;  %v2840_v27 = vld [vmem:[#allocation5_spill] sm:$0xff] }
 0x15f   : > { %2081 = vmatpush3.bf16.msra.mxu1 %v2597_v58  ;;  %v1758_v58 = vcombine.low %v2536_v63, %v2536_v63  ;;  %v2818_v63 = vpack.c.bf16 %v2400_v40, %v2396_v38  ;;  %v2823_v38 = vpack.c.bf16 %v2510_v20, %v2508_v13  ;;  %v2824_v40 = vpack.c.bf16 %v2443_v4, %v2439_v2  ;;  %v2849_v13 = vld [vmem:[#allocation9_spill] sm:$0xff] }
 0x160   : > { %v2202_v46 = vpop.f32.mrb[60].mxu0  ;;  %2082 = vmatprep.subr.bf16.mxu1 %v919_v30  ;;  %v2826_v54 = vpack.c.bf16 %v2437_v0, %v2433_v62  ;;  %v2829_v56 = vpack.c.bf16 %v2521_v32, %v2519_v28  ;;  %v2830_v2 = vpack.c.bf16 %v2457_v12, %v2453_v10  ;;  %v2831_v62 = vpack.c.bf16 %v2635_v11, %v2633_v3  ;;  %v2836_v12 = vld [vmem:[#allocation18_spill] sm:$0xff]  ;;  %v2851_v28 = vld [vmem:[#allocation8_spill] sm:$0xff]  ;;  %v2852_v32 = vld [vmem:[#allocation7_spill] sm:$0xff] }
 0x161   : > { %v875_v29 = vpop.f32.mrb[61].mxu0  ;;  %v1369_v35 = vmul.f32 %v2202_v46, %v2202_v46  ;;  %v2832_v0 = vpack.c.bf16 %v2557_v47, %v2553_v31  ;;  %v2833_v4 = vpack.c.bf16 %v2631_v5, %v2629_v44  ;;  %v2848_v44 = vld [vmem:[#allocation10_spill] sm:$0xff]  ;;  %v2855_v3 = vld [vmem:[#allocation13_spill] sm:$0xff] }
 0x162   : > { %v2203_v59 = vpop.f32.mrb[62].mxu0  ;;  %v1367_v19 = vmul.f32 %v875_v29, %v875_v29  ;;  %v2850_v20 = vpack.c.bf16 %v2848_v44, %v2849_v13 }
 0x163   : > { %v921_v17 = vpack.c.bf16 %v2203_v59, %v2202_v46  ;;  %v1370_v6 = vmul.f32 %v2203_v59, %v2203_v59  ;;  %v878_v23 = vpop.f32.mrb[63].mxu0  ;;  %2083 = vmatpush3.bf16.msra.mxu1 %v2591_v61  ;;  %v2816_v61 = vpack.c.bf16 %v2404_v43, %v2402_v42  ;;  %v2821_v42 = vpack.c.bf16 %v2489_v41, %v2487_v36  ;;  %v2842_v41 = vld [vmem:[#allocation16_spill] sm:$0xff] }
 0x164   : > { %v920_v45 = vpack.c.bf16 %v878_v23, %v875_v29  ;;  %v1368_v33 = vmul.f32 %v878_v23, %v878_v23  ;;  %v2825_v43 = vpack.c.bf16 %v2505_v8, %v2503_v1  ;;  %v2845_v1 = vld [vmem:[#allocation4_spill] sm:$0xff]  ;;  %v2846_v8 = vld [vmem:[#allocation3_spill] sm:$0xff] }
 0x165   : > { %2016 = vst [vmem:[%s2394_s9 + $0xf8] sm:$0xff] %v921_v17   ;;  %v1402_v7 = vpack.c.bf16 %v1370_v6, %v1369_v35  ;;  %v2819_v6 = vpack.c.bf16 %v2494_v53, %v2492_v48  ;;  %v2843_v48 = vld [vmem:[#allocation15_spill] sm:$0xff]  ;;  %v2847_v5 = vpack.c.bf16 %v2845_v1, %v2846_v8 }
 0x166   : > { %2015 = vst [vmem:[%s2394_s9 + $0xf0] sm:$0xff] %v920_v45   ;;  %v1401_v57 = vpack.c.bf16 %v1368_v33, %v1367_v19  ;;  %2084 = vmatprep.subr.bf16.mxu1 %v920_v45  ;;  %v2844_v53 = vpack.c.bf16 %v2842_v41, %v2843_v48 }
 0x167   : > { %2085 = vmatpush3.bf16.msra.mxu1 %v2617_v25  ;;  %v2817_v25 = vpack.c.bf16 %v2475_v24, %v2473_v22  ;;  %v2839_v24 = vld [vmem:[#allocation6_spill] sm:$0xff] }
 0x168   : > { %2086 = vmatprep.subr.bf16.mxu1 %v921_v17  ;;  %v2841_v36 = vpack.c.bf16 %v2839_v24, %v2840_v27 }
 0x16b   : > { %2087 = vmatpush3.bf16.msra.mxu1 %v2611_v55 }
 0x16c   : > { %2094 = vmatprep.subr.bf16.mxu1 %v2815_v21 }
 0x16e   : > { %1299 = vmatmul.mubr.bf16.vlgmr.msra.gmra.mrb[4].mxu1 %v1758_v58 }
 0x16f   : > { %2095 = vmatpush3.bf16.msra.mxu1 %v2816_v61  ;;  %1435 = vmatprep.mubr.bf16.mxu1 %v2386_v34  ;;  %v2822_v34 = vpack.c.bf16 %v2417_v52, %v2413_v50  ;;  %v2827_v50 = vpack.c.bf16 %v2526_v49, %v2524_v37  ;;  %v2828_v52 = vpack.c.bf16 %v2463_v16, %v2459_v14  ;;  %v2834_v14 = vld [vmem:[#allocation2_spill] sm:$0xff]  ;;  %v2837_v16 = vld [vmem:[#allocation17_spill] sm:$0xff] }
 0x170   : > { %2096 = vmatprep.subr.bf16.mxu1 %v2817_v25  ;;  %v2835_v10 = vpack.c.bf16 %v2546_v51, %v2834_v14  ;;  %v2838_v22 = vpack.c.bf16 %v2836_v12, %v2837_v16  ;;  %v2853_v37 = vpack.c.bf16 %v2851_v28, %v2852_v32  ;;  %v2854_v49 = vld [vmem:[#allocation14_spill] sm:$0xff]  ;;  %v2857_v51 = vld [vmem:[#allocation12_spill] sm:$0xff] }
 0x173   : > { %2097 = vmatpush3.bf16.msra.mxu1 %v2818_v63 }
 0x174   : > { %2098 = vmatprep.subr.bf16.mxu1 %v2819_v6 }
 0x177   : > { %2099 = vmatpush3.bf16.msra.mxu1 %v2820_v26 }
 0x178   : > { %2100 = vmatprep.subr.bf16.mxu1 %v2821_v42 }
 0x17b   : > { %2101 = vmatpush3.bf16.msra.mxu1 %v2822_v34 }
 0x17c   : > { %2102 = vmatprep.subr.bf16.mxu1 %v2823_v38 }
 0x17f   : > { %2103 = vmatpush3.bf16.msra.mxu1 %v2824_v40 }
 0x180   : > { %2104 = vmatprep.subr.bf16.mxu1 %v2825_v43 }
 0x183   : > { %2105 = vmatpush3.bf16.msra.mxu1 %v2826_v54 }
 0x184   : > { %2106 = vmatprep.subr.bf16.mxu1 %v2827_v50 }
 0x187   : > { %2107 = vmatpush3.bf16.msra.mxu1 %v2828_v52 }
 0x188   : > { %2108 = vmatprep.subr.bf16.mxu1 %v2829_v56 }
 0x18b   : > { %2109 = vmatpush3.bf16.msra.mxu1 %v2830_v2 }
 0x18c   : > { %2116 = vmatprep.subr.bf16.mxu1 %v2831_v62 }
 0x18e   : > { %1436 = vmatmul.mubr.bf16.vlgmr.msra.gmra.mrb[8].mxu1 %v2540_v9  ;;  %v2856_v9 = vpack.c.bf16 %v2854_v49, %v2855_v3 }
 0x18f   : > { %2117 = vmatpush3.bf16.msra.mxu1 %v2832_v0  ;;  %1475 = vmatprep.mubr.bf16.mxu1 %v2551_v15  ;;  %v2858_v15 = vld [vmem:[#allocation11_spill] sm:$0xff] }
 0x190   : > { %2118 = vmatprep.subr.bf16.mxu1 %v2833_v4  ;;  %v2859_v31 = vpack.c.bf16 %v2857_v51, %v2858_v15 }
 0x193   : > { %2119 = vmatpush3.bf16.msra.mxu1 %v2835_v10 }
 0x194   : > { %2120 = vmatprep.subr.bf16.mxu1 %v2838_v22 }
 0x197   : > { %2121 = vmatpush3.bf16.msra.mxu1 %v2841_v36 }
 0x198   : > { %2122 = vmatprep.subr.bf16.mxu1 %v2844_v53 }
 0x19b   : > { %2123 = vmatpush3.bf16.msra.mxu1 %v2847_v5 }
 0x19c   : > { %2124 = vmatprep.subr.bf16.mxu1 %v1399_v60 }
 0x19f   : > { %2125 = vmatpush3.bf16.msra.mxu1 %v2850_v20 }
 0x1a0   : > { %2126 = vmatprep.subr.bf16.mxu1 %v1400_v39 }
 0x1a3   : > { %2127 = vmatpush3.bf16.msra.mxu1 %v2853_v37 }
 0x1a4   : > { %2128 = vmatprep.subr.bf16.mxu1 %v1401_v57 }
 0x1a7   : > { %2129 = vmatpush3.bf16.msra.mxu1 %v2856_v9 }
 0x1a8   : > { %2130 = vmatprep.subr.bf16.mxu1 %v1402_v7 }
 0x1ab   : > { %2131 = vmatpush3.bf16.msra.mxu1 %v2859_v31 }
 0x1ae   : > { %1476 = vmatmul.mubr.bf16.vlgmr.msra.gmra.mrb[12].mxu1 %v1758_v58 }
 0x201   : > { %v2066_v47 = vpop.f32.mrb[0].mxu1 }
 0x202   : > { %v2067_v11 = vpop.f32.mrb[1].mxu1 }
 0x203   : > { %v2068_v55 = vadd.f32 %v2067_v11, %v2066_v47  ;;  %v2069_v45 = vpop.f32.mrb[2].mxu1 }
 0x204   : > { %v2070_v18 = vpop.f32.mrb[3].mxu1 }
 0x241   : > { %v2088_v35 = vpop.f32.mrb[4].mxu1 }
 0x242   : > { %v2089_v30 = vpop.f32.mrb[5].mxu1 }
 0x243   : > { %v2090_v39 = vadd.f32 %v2089_v30, %v2088_v35  ;;  %v2091_v60 = vpop.f32.mrb[6].mxu1 }
 0x244   : > { %v2092_v46 = vpop.f32.mrb[7].mxu1 }
 0x245   : > { %v1301_v29 = vadd.f32 %v2090_v39, %v2068_v55 }
 0x247   : > { %1306 = vst [vmem:[%s266_s13] sm:$0xff] %v1301_v29 }
 0x261   : > { %v2110_v59 = vpop.f32.mrb[8].mxu1 }
 0x262   : > { %v2111_v17 = vpop.f32.mrb[9].mxu1 }
 0x263   : > { %v2112_v23 = vadd.f32 %v2111_v17, %v2110_v59  ;;  %v2113_v19 = vpop.f32.mrb[10].mxu1 }
 0x264   : > { %v2114_v33 = vpop.f32.mrb[11].mxu1 }
 0x281   : > { %v2132_v7 = vpop.f32.mrb[12].mxu1 }
 0x282   : > { %v2133_v57 = vpop.f32.mrb[13].mxu1 }
 0x283   : > { %v2134_v58 = vadd.f32 %v2133_v57, %v2132_v7  ;;  %v2135_v21 = vpop.f32.mrb[14].mxu1 }
 0x284   : > { %v2136_v61 = vpop.f32.mrb[15].mxu1 }
 0x285   : > { %v1478_v25 = vadd.f32 %v2134_v58, %v2112_v23 }
 0x287   : > { %1483 = vst [vmem:[%s270_s16] sm:$0xff] %v1478_v25 }
 0x288 PF: > { %s16_s18 = sadd.s32 1, %s2255_s18  }
 0x289   : > { %p13_p6 = scmp.ge.s32.totalorder %s16_s18, 4  }
 0x28b   :  { %15 = sbr.rel (!%p13_p6) target bundleno = 1 (0x1), region = 89 }

</bundles_post_ra>
